<compile_context>
chip_gen: v5e
topology: v5e:2x2
jax: 0.10.0
libtpu: 0.0.40
codegen_flags: <defaults>
</compile_context>

<pallas_src>
import jax
import jax.numpy as jnp
from jax.experimental import pallas as pl
from jax.experimental.pallas import tpu as pltpu


def _linear_logsoftmax_kernel(x_ref, w_ref, b_ref, o_ref):
    # x_ref: (TB, F)  w_ref: (F, O)  b_ref: (1, O)  o_ref: (TB, O)
    x = x_ref[...]
    w = w_ref[...]
    b = b_ref[...]

    # Linear layer (MXU matmul, f32 accumulate) + per-class bias broadcast.
    logits = jnp.dot(x, w, preferred_element_type=jnp.float32) + b

    # Numerically-stable log_softmax along the last axis (PyTorch dim=1).
    m = jnp.max(logits, axis=-1, keepdims=True)
    shifted = logits - m
    lse = jnp.log(jnp.sum(jnp.exp(shifted), axis=-1, keepdims=True))
    o_ref[...] = (shifted - lse).astype(o_ref.dtype)


def linear_log_softmax(x, w_t, b, *, batch_tile=4096):
    """x: (B, F) f32, w_t: (F, O) f32, b: (O,) f32 -> (B, O) f32 log-probs."""
    B, F = x.shape
    F2, O = w_t.shape
    assert F == F2
    b2 = b.reshape(1, O).astype(jnp.float32)

    cost = pl.CostEstimate(
        flops=2 * B * F * O,
        transcendentals=B * (O + 1),                 # exp per logit + log per row
        bytes_accessed=4 * (B * F + F * O + O + B * O),
    )

    if B <= batch_tile:
        # Small batch: no grid, no pipelining machinery.  A single kernel
        # invocation on whole VMEM-resident arrays avoids the per-grid-step
        # pipeline overhead that would dominate this tiny problem.
        return pl.pallas_call(
            _linear_logsoftmax_kernel,
            out_shape=jax.ShapeDtypeStruct((B, O), jnp.float32),
            in_specs=[
                pl.BlockSpec(memory_space=pltpu.MemorySpace.VMEM),
                pl.BlockSpec(memory_space=pltpu.MemorySpace.VMEM),
                pl.BlockSpec(memory_space=pltpu.MemorySpace.VMEM),
            ],
            out_specs=pl.BlockSpec(memory_space=pltpu.MemorySpace.VMEM),
            cost_estimate=cost,
        )(x, w_t, b2)

    # Large batch: tile only the batch axis; weight/bias stay resident.
    tb = batch_tile
    assert tb % 8 == 0
    grid = (pl.cdiv(B, tb),)
    return pl.pallas_call(
        _linear_logsoftmax_kernel,
        out_shape=jax.ShapeDtypeStruct((B, O), jnp.float32),
        grid=grid,
        in_specs=[
            pl.BlockSpec((tb, F), lambda i: (i, 0)),   # batch-tiled activations
            pl.BlockSpec((F, O), lambda i: (0, 0)),    # resident weight
            pl.BlockSpec((1, O), lambda i: (0, 0)),    # resident bias
        ],
        out_specs=pl.BlockSpec((tb, O), lambda i: (i, 0)),
        compiler_params=pltpu.CompilerParams(
            # Batch grid points are independent -> shard across TCs on v7x.
            dimension_semantics=("parallel",)
        ),
        cost_estimate=cost,
    )(x, w_t, b2)


def reference(x, w_t, b):
    logits = x @ w_t + b
    return jax.nn.log_softmax(logits, axis=1)


if __name__ == "__main__":
    # Small shapes consistent with the module: batch=8, n_feature=32, n_output=16.
    B, n_feature, n_output = 8, 32, 16

    key = jax.random.PRNGKey(0)
    kx, kw, kb = jax.random.split(key, 3)

    x = jax.random.normal(kx, (B, n_feature), dtype=jnp.float32)
    # Deterministic init mimicking nn.Linear's uniform(-1/sqrt(F), 1/sqrt(F)).
    bound = 1.0 / jnp.sqrt(jnp.float32(n_feature))
    w = jax.random.uniform(kw, (n_output, n_feature), jnp.float32, -bound, bound)
    b = jax.random.uniform(kb, (n_output,), jnp.float32, -bound, bound)
    w_t = w.T  # (n_feature, n_output)

    # Small-batch (grid-less) path.
    out = linear_log_softmax(x, w_t, b)
    jax.block_until_ready(out)
    ref = reference(x, w_t, b)
    assert out.shape == (B, n_output)
    assert jnp.allclose(out, ref, atol=1e-5, rtol=1e-5)

    # Exercise the batch-tiled path as well (still small & fast).
    B_big = 256
    x_big = jax.random.normal(jax.random.PRNGKey(1), (B_big, n_feature),
                              dtype=jnp.float32)
    out_big = linear_log_softmax(x_big, w_t, b, batch_tile=128)
    jax.block_until_ready(out_big)
    ref_big = reference(x_big, w_t, b)
    assert out_big.shape == (B_big, n_output)
    assert jnp.allclose(out_big, ref_big, atol=1e-5, rtol=1e-5)

    print("KERNEL_OK")
</pallas_src>

<mosaic_0001>
module attributes {stable_mosaic.version = 11 : i64} {
  func.func @_linear_logsoftmax_kernel(%arg0: memref<8x32xf32, #tpu.memory_space<vmem>>, %arg1: memref<32x16xf32, #tpu.memory_space<vmem>>, %arg2: memref<1x16xf32, #tpu.memory_space<vmem>>, %arg3: memref<8x16xf32, #tpu.memory_space<vmem>>) attributes {dimension_semantics = [], scalar_prefetch = 0 : i64, scratch_operands = 0 : i64, tpu.core_type = #tpu.core_type<tc>} {
    %c0 = arith.constant 0 : index
    %c0_0 = arith.constant 0 : index
    %0 = vector.load %arg0[%c0, %c0_0] : memref<8x32xf32, #tpu.memory_space<vmem>>, vector<8x32xf32>
    %c0_1 = arith.constant 0 : index
    %c0_2 = arith.constant 0 : index
    %1 = vector.load %arg1[%c0_1, %c0_2] : memref<32x16xf32, #tpu.memory_space<vmem>>, vector<32x16xf32>
    %c0_3 = arith.constant 0 : index
    %c0_4 = arith.constant 0 : index
    %2 = vector.load %arg2[%c0_3, %c0_4] : memref<1x16xf32, #tpu.memory_space<vmem>>, vector<1x16xf32>
    %cst = arith.constant dense<0.000000e+00> : vector<8x16xf32>
    %3 = tpu.matmul %0, %1, %cst {dimension_numbers = #tpu.dot_dimension_numbers<[1], [0], [0], [1], [0, 0, 1, 1], [], []>} : vector<8x32xf32>, vector<32x16xf32>, vector<8x16xf32> -> vector<8x16xf32>
    %4 = vector.broadcast %2 : vector<1x16xf32> to vector<8x16xf32>
    %5 = arith.addf %3, %4 : vector<8x16xf32>
    %cst_5 = arith.constant dense<0xFF800000> : vector<8xf32>
    %6 = vector.multi_reduction <maximumf>, %5, %cst_5 [1] : vector<8x16xf32> to vector<8xf32>
    %7 = vector.shape_cast %6 : vector<8xf32> to vector<8x1xf32>
    %8 = vector.broadcast %7 : vector<8x1xf32> to vector<8x16xf32>
    %9 = arith.subf %5, %8 : vector<8x16xf32>
    %10 = math.exp %9 : vector<8x16xf32>
    %cst_6 = arith.constant dense<0.000000e+00> : vector<8xf32>
    %11 = vector.multi_reduction <add>, %10, %cst_6 [1] : vector<8x16xf32> to vector<8xf32>
    %12 = vector.shape_cast %11 : vector<8xf32> to vector<8x1xf32>
    %13 = math.log %12 : vector<8x1xf32>
    %14 = vector.broadcast %13 : vector<8x1xf32> to vector<8x16xf32>
    %15 = arith.subf %9, %14 : vector<8x16xf32>
    %c0_7 = arith.constant 0 : index
    %c0_8 = arith.constant 0 : index
    %16 = vector.load %arg3[%c0_7, %c0_8] : memref<8x16xf32, #tpu.memory_space<vmem>>, vector<8x16xf32>
    tpu.vector_store %arg3[%c0_7, %c0_8], %15 {strides = array<i32>} : memref<8x16xf32, #tpu.memory_space<vmem>>, vector<8x16xf32>,
    return
  }
}

</mosaic_0001>

<bundles_post_ra>
// kernel: tpu_custom_call.1
= control target key start
LH: loop header
LB: loop body
LE: loop exit
PB: predicated region body
PF: predicated region fallthrough
CT: control target
= control target key end

     0   :  { %s156_s0 = inlined_call_operand.vmem [shape: f32[8,32], index: 0, kind: input, shape index: {}]   ;;  %s157_s1 = inlined_call_operand.vmem [shape: f32[32,16], index: 1, kind: input, shape index: {}]   ;;  %s158_s2 = inlined_call_operand.vmem [shape: f32[1,16], index: 2, kind: input, shape index: {}]   ;;  %s159_s3 = inlined_call_operand.hbm [shape: f32[8,16], index: 3, kind: output, shape index: {}]  }
   0x1   :  { %v19_v0 = vld [vmem:[%s157_s1 + $0x18] sm:$0xff]  ;;  %v18_v1 = vld [vmem:[%s157_s1 + $0x10] sm:$0xff]  ;;  %v17_v2 = vld [vmem:[%s157_s1 + $0x8] sm:$0xff] }
   0x2   :  { %40 = vmatpush.msra.mxu0 %v19_v0 }
   0x3   :  { %8 = vsyncpa [#allocation3], 0  ;;  %v16_v3 = vld [vmem:[%s157_s1] sm:$0xff]  ;;  %vm24_vm0 = vcmask 261120   ;;  %vm48_vm1 = vcmask 130048   ;;  %s69_s25 = sshll.u32 %s159_s3, 4  ;;  %s70_s25 = int_to_ptr.hbm [resolvable:$true] %s69_s25 }
   0x4   :  { %41 = vmatpush.msra.mxu0 %v18_v1  ;;  %v15_v4 = vld [vmem:[%s156_s0] sm:$0xff]  ;;  %s111_s0 = smov [#allocation2]  }
   0x5   :  { %v80_v5 = vld [vmem:[%s158_s2] ss:$0 sm:$0xff]  ;;  %s67_s1 = sshll.u32 %s111_s0, 4  ;;  %s68_s1 = int_to_ptr.vmem [resolvable:$true] %s67_s1 }
   0x6   :  { %42 = vmatpush.msra.mxu0 %v17_v2 }
   0x8   :  { %43 = vmatpush.msra.mxu0 %v16_v3 }
   0x9   :  { %78 = vmatmul.msk.f32.vlgmr.msra.gmra.mxu0 %vm24_vm0, %v15_v4 }
  0x86   :  { %v45_v6 = vpop.f32.mrf.mxu0 }
  0x87   :  { %v46_v7 = vadd.f32 %v80_v5, %v45_v6 }
  0x89   :  { %v49_v8 = vsel %vm48_vm1, %v46_v7, -inf }
  0x8a   :  { %50 = vmax.xlane.f32.xlu0 %v49_v8 }
  0xfd   :  { %v51_v9 = vpop.xlane.xlu0 %50 }
  0xfe   :  { %v52_v10 = vsub.f32 %v46_v7, %v51_v9 }
 0x100   :  { %v53_v11 = vmul.f32 1.442695, %v52_v10 }
 0x102   :  { %81 = vpow2.f32 %v53_v11 }
 0x108   :  { %v82_v12 = vpop.eup %81 }
 0x109   :  { %v55_v13 = vsel %vm48_vm1, %v82_v12, 0.0 }
 0x10a   :  { %56 = vadd.xlane.f32.xlu0 %v55_v13 }
 0x17d   :  { %v57_v14 = vpop.xlane.xlu0 %56 }
 0x17e   :  { %83 = vlog2.f32 %v57_v14 }
 0x184   :  { %v84_v15 = vpop.eup %83 }
 0x185   :  { %v59_v16 = vmul.f32 0.6931472, %v84_v15 }
 0x187   :  { %v60_v17 = vsub.f32 %v52_v10, %v59_v16 }
 0x189   :  { %61 = vst.msk [vmem:[#allocation2] sm:$0xff] %vm48_vm1, %v60_v17 }
 0x18a   :  { %72 = dma.vmem_to_hbm [thread:$0]  %s68_s1, 128, %s70_s25, [#allocation3]  }
 0x18b   :  { %109 = dma.done.wait [#allocation3], 128  }
 0x18c   :  { %110 = vsyncadd [#allocation3], 4294967168 }
 0x18d   :  { %77 = vsyncpa [#allocation3], 1 }

</bundles_post_ra>
